<compile_context>
chip_gen: v7x
topology: tpu7x:2x2x1
jax: 0.10.0
libtpu: 0.0.40
codegen_flags: <defaults>
</compile_context>

<pallas_src>
import functools

import jax
import jax.numpy as jnp
from jax.experimental import pallas as pl
from jax.experimental.pallas import tpu as pltpu

N_FEATURES = 10
HIDDEN = 256


def _disc_kernel(xT_ref, w1_ref, w2_ref, b2_ref, o_ref):
    # xT_ref: (11, TB)   -- last row is ones (folds b1 into the matmul)
    # w1_ref: (256, 11)  -- last column is b1
    # w2_ref: (1, 256)   -- bf16
    # b2_ref: (1,) in SMEM (f32 scalar)
    # o_ref:  (1, TB)    -- f32
    xT = xT_ref[...]
    w1 = w1_ref[...]
    w2 = w2_ref[...]
    b2 = b2_ref[0]  # scalar from SMEM

    # Layer 1: Linear(10 -> 256) with bias folded into the MXU matmul,
    # f32 accumulation, ReLU in f32.
    hT = jnp.dot(w1, xT, preferred_element_type=jnp.float32)      # (256, TB)
    hT = jnp.maximum(hT, 0.0)

    # Cast hidden stream to bf16 before the layer-2 MXU push: halves the
    # (256, TB) spill traffic (binding vst slot on v5e) and vex push count.
    h_bf16 = hT.astype(jnp.bfloat16)

    # Layer 2: Linear(256 -> 1) + Sigmoid.  (1,256)x(256,TB) MXU op,
    # lane-dense (1, TB) result; accumulation in f32.
    logits = jnp.dot(w2, h_bf16, preferred_element_type=jnp.float32) + b2
    o_ref[...] = jax.nn.sigmoid(logits).astype(o_ref.dtype)


def _round_up(x, m):
    return ((x + m - 1) // m) * m


def _cdiv(a, b):
    return (a + b - 1) // b


@functools.partial(jax.jit, static_argnames=("tile_b", "compute_dtype"))
def discriminator_forward(x, w1, b1, w2, b2, *, tile_b=8192,
                          compute_dtype=jnp.bfloat16):
    """x: (B, 10) float32, PyTorch-layout weights -> (B, 1) float32.

    w1: (256, 10)  b1: (256,)  w2: (1, 256)  b2: (1,)
    compute_dtype controls the layer-1 input/weight stream dtype (default
    bf16, halves HBM traffic; accumulation is always f32). The hidden
    activation and w2 are always bf16 into the layer-2 matmul.
    """
    B = x.shape[0]

    # Pick a lane-aligned batch tile.  Force >= 2 grid steps so the
    # "parallel" batch axis shards across both v7x TensorCores and padding
    # waste stays small when B is just above tile_b.
    n_tiles = max(2, _cdiv(B, tile_b))
    tb = _round_up(_cdiv(B, n_tiles), 128)
    b_pad = tb * n_tiles

    # Single fused prep pass over x: pad batch, append the ones column that
    # folds b1, transpose to (features+1, batch) so batch -> lanes, cast.
    x_p = x if b_pad == B else jnp.pad(x, ((0, b_pad - B), (0, 0)))
    ones_col = jnp.ones((b_pad, 1), x.dtype)
    xT_aug = jnp.concatenate([x_p, ones_col], axis=1).T.astype(compute_dtype)
    # xT_aug: (11, b_pad)

    # Fold b1 into W1 as an extra column (PyTorch layout preserved otherwise).
    w1_aug = jnp.concatenate(
        [w1, b1.reshape(HIDDEN, 1)], axis=1).astype(compute_dtype)  # (256, 11)
    w2_c = w2.astype(jnp.bfloat16)                                  # (1, 256)
    b2_s = b2.astype(jnp.float32).reshape(1)                        # (1,) -> SMEM

    grid = (n_tiles,)

    out_padded = pl.pallas_call(
        _disc_kernel,
        out_shape=jax.ShapeDtypeStruct((1, b_pad), jnp.float32),
        grid=grid,
        in_specs=[
            # activation stream: tiled over batch (lanes)
            pl.BlockSpec((N_FEATURES + 1, tb), lambda i: (0, i)),
            # weights: same block every step -> resident in VMEM
            pl.BlockSpec((HIDDEN, N_FEATURES + 1), lambda i: (0, 0)),
            pl.BlockSpec((1, HIDDEN), lambda i: (0, 0)),
            # scalar bias lives in SMEM
            pl.BlockSpec(memory_space=pltpu.MemorySpace.SMEM),
        ],
        out_specs=pl.BlockSpec((1, tb), lambda i: (0, i)),
        compiler_params=pltpu.CompilerParams(
            dimension_semantics=("parallel",),
        ),
    )(xT_aug, w1_aug, w2_c, b2_s)

    # Back to PyTorch (B, 1) layout, dropping batch padding.
    return jnp.transpose(out_padded[:, :B])


def init_params(key):
    """Deterministic init mimicking PyTorch's default U(-1/sqrt(fan_in), +).

    Weights are in PyTorch layout: fc1.weight (256, 10), fc2.weight (1, 256).
    """
    k1, k2, k3, k4 = jax.random.split(key, 4)
    bound1 = 1.0 / jnp.sqrt(N_FEATURES)
    bound2 = 1.0 / jnp.sqrt(HIDDEN)
    w1 = jax.random.uniform(k1, (HIDDEN, N_FEATURES), jnp.float32, -bound1, bound1)
    b1 = jax.random.uniform(k2, (HIDDEN,), jnp.float32, -bound1, bound1)
    w2 = jax.random.uniform(k3, (1, HIDDEN), jnp.float32, -bound2, bound2)
    b2 = jax.random.uniform(k4, (1,), jnp.float32, -bound2, bound2)
    return w1, b1, w2, b2


def _reference(x, w1, b1, w2, b2):
    h = jnp.maximum(x @ w1.T + b1[None, :], 0.0)
    logits = h @ w2.T + b2[None, :]
    return jax.nn.sigmoid(logits)


if __name__ == "__main__":
    key = jax.random.PRNGKey(0)
    kx, kp = jax.random.split(key)

    batch = 8
    x = jax.random.normal(kx, (batch, N_FEATURES), dtype=jnp.float32)
    w1, b1, w2, b2 = init_params(kp)

    out = discriminator_forward(x, w1, b1, w2, b2)
    out = jax.block_until_ready(out)

    ref = _reference(x, w1, b1, w2, b2)
    assert out.shape == (batch, 1), out.shape
    # bf16 activation/weight stream -> loosened tolerance vs. the f32 reference
    # (expected precision loss, not a kernel bug).
    assert jnp.allclose(out, ref, atol=2e-2, rtol=2e-2), (
        f"max abs diff {jnp.max(jnp.abs(out - ref))}")

    print("KERNEL_OK")
</pallas_src>

<mosaic_0001>
module attributes {stable_mosaic.version = 11 : i64} {
  func.func @_disc_kernel(%arg0: i32, %arg1: memref<11x128xbf16, #tpu.memory_space<vmem>>, %arg2: memref<256x11xbf16, #tpu.memory_space<vmem>>, %arg3: memref<1x256xbf16, #tpu.memory_space<vmem>>, %arg4: memref<1xf32, #tpu.memory_space<smem>>, %arg5: memref<1x128xf32, #tpu.memory_space<vmem>>) attributes {dimension_semantics = [#tpu.dimension_semantics<parallel>], iteration_bounds = array<i64: 2>, scalar_prefetch = 0 : i64, scratch_operands = 0 : i64, tpu.core_type = #tpu.core_type<tc>, window_params = [{transform_indices = @transform_0, window_bounds = array<i64: 11, 128>}, {pipeline_mode = #tpu.pipeline_mode<synchronous>, transform_indices = @transform_1, window_bounds = array<i64: 256, 11>}, {pipeline_mode = #tpu.pipeline_mode<synchronous>, transform_indices = @transform_2, window_bounds = array<i64: 1, 256>}, {transform_indices = @transform_3, window_bounds = array<i64: 1>}, {transform_indices = @transform_4, window_bounds = array<i64: 1, 128>}]} {
    %c0 = arith.constant 0 : index
    %c0_0 = arith.constant 0 : index
    %0 = vector.load %arg1[%c0, %c0_0] : memref<11x128xbf16, #tpu.memory_space<vmem>>, vector<11x128xbf16>
    %c0_1 = arith.constant 0 : index
    %c0_2 = arith.constant 0 : index
    %1 = vector.load %arg2[%c0_1, %c0_2] : memref<256x11xbf16, #tpu.memory_space<vmem>>, vector<256x11xbf16>
    %c0_3 = arith.constant 0 : index
    %c0_4 = arith.constant 0 : index
    %2 = vector.load %arg3[%c0_3, %c0_4] : memref<1x256xbf16, #tpu.memory_space<vmem>>, vector<1x256xbf16>
    %c0_5 = arith.constant 0 : index
    %3 = memref.load %arg4[%c0_5] : memref<1xf32, #tpu.memory_space<smem>>
    %cst = arith.constant dense<0.000000e+00> : vector<256x128xf32>
    %4 = tpu.matmul %1, %0, %cst {dimension_numbers = #tpu.dot_dimension_numbers<[1], [0], [0], [1], [0, 0, 1, 1], [], []>} : vector<256x11xbf16>, vector<11x128xbf16>, vector<256x128xf32> -> vector<256x128xf32>
    %cst_6 = arith.constant 0.000000e+00 : f32
    %5 = vector.broadcast %cst_6 : f32 to vector<256x128xf32>
    %6 = arith.maximumf %4, %5 : vector<256x128xf32>
    %7 = arith.truncf %6 : vector<256x128xf32> to vector<256x128xbf16>
    %cst_7 = arith.constant dense<0.000000e+00> : vector<1x128xf32>
    %8 = tpu.matmul %2, %7, %cst_7 {dimension_numbers = #tpu.dot_dimension_numbers<[1], [0], [0], [1], [0, 0, 1, 1], [], []>} : vector<1x256xbf16>, vector<256x128xbf16>, vector<1x128xf32> -> vector<1x128xf32>
    %9 = vector.broadcast %3 : f32 to vector<1x128xf32>
    %10 = arith.addf %8, %9 : vector<1x128xf32>
    %11 = arith.negf %10 : vector<1x128xf32>
    %12 = math.exp %11 : vector<1x128xf32>
    %cst_8 = arith.constant 1.000000e+00 : f32
    %13 = vector.broadcast %cst_8 : f32 to vector<1x128xf32>
    %14 = arith.addf %13, %12 : vector<1x128xf32>
    %15 = arith.divf %13, %14 : vector<1x128xf32>
    %c0_9 = arith.constant 0 : index
    %c0_10 = arith.constant 0 : index
    %16 = vector.load %arg5[%c0_9, %c0_10] : memref<1x128xf32, #tpu.memory_space<vmem>>, vector<1x128xf32>
    tpu.vector_store %arg5[%c0_9, %c0_10], %15 {strides = array<i32>} : memref<1x128xf32, #tpu.memory_space<vmem>>, vector<1x128xf32>,
    return
  }
  func.func @transform_0(%arg0: i32) -> (i32, i32) {
    %c0_i32 = arith.constant 0 : i32
    %c0_i32_0 = arith.constant 0 : i32
    return %c0_i32, %arg0 : i32, i32
  }
  func.func @transform_1(%arg0: i32) -> (i32, i32) {
    %c0_i32 = arith.constant 0 : i32
    %c0_i32_0 = arith.constant 0 : i32
    %c0_i32_1 = arith.constant 0 : i32
    return %c0_i32, %c0_i32_0 : i32, i32
  }
  func.func @transform_2(%arg0: i32) -> (i32, i32) {
    %c0_i32 = arith.constant 0 : i32
    %c0_i32_0 = arith.constant 0 : i32
    %c0_i32_1 = arith.constant 0 : i32
    return %c0_i32, %c0_i32_0 : i32, i32
  }
  func.func @transform_3(%arg0: i32) -> i32 {
    %c0_i32 = arith.constant 0 : i32
    %c0_i32_0 = arith.constant 0 : i32
    return %c0_i32 : i32
  }
  func.func @transform_4(%arg0: i32) -> (i32, i32) {
    %c0_i32 = arith.constant 0 : i32
    %c0_i32_0 = arith.constant 0 : i32
    return %c0_i32, %arg0 : i32, i32
  }
}

</mosaic_0001>

<bundles_post_ra>
// kernel: discriminator_forward.1
= control target key start
LH: loop header
LB: loop body
LE: loop exit
PB: predicated region body
PF: predicated region fallthrough
CT: control target
= control target key end

     0   :  { %s1105_s0 = inlined_call_operand.vmem [shape: bf16[11,256], index: 0, kind: input, shape index: {}]   ;;  %s1106_s1 = inlined_call_operand.vmem [shape: bf16[256,11], index: 1, kind: input, shape index: {}]   ;;  %s1107_s2 = inlined_call_operand.vmem [shape: bf16[1,256], index: 2, kind: input, shape index: {}]   ;;  %s1108_s3 = inlined_call_operand.<no memory space> [shape: f32[1], index: 3, kind: input, shape index: {}]   ;;  %s1109_s4 = inlined_call_operand.vmem [shape: f32[1,256], index: 4, kind: output, shape index: {}]  }
   0x1   :  { %9 = sst [smem:[#allocation2]] %s1108_s3 }
   0x2   :  { %s972_s17 = smov 0   ;;  %s974_s18 = smov 0  }
   0x3   :  { %s976_s19 = smov 0  }
   0x4 LB: > { %s753_s3 = sadd.s32 4294967295, %s940_s19   ;;  %s989_s20 = sadd.s32 1, %s940_s19   ;;  %s940_s19 = sphi %s976_s19, %s1112_s19   ;;  %s936_s18 = sphi %s974_s18, %s1111_s18   ;;  %s932_s17 = sphi %s972_s17, %s1110_s17  }
   0x5   : > { %s19_s21 = ssub.s32 %s940_s19, %s989_s20  ;;  %s22_s22 = sadd.s32 1, %s936_s18 }
   0x6   : > { %p20_p0 = scmp.eq.s32.totalorder %s19_s21, 0  ;;  %p29_p1 = scmp.ne.s32.totalorder %s936_s18, %s932_s17 }
   0x7   : > { %p30_p2 = scmp.eq.s32.totalorder %s940_s19, 0  ;;  %p756_p4 = scmp.ge.s32.totalorder %s940_s19, 2 }
   0x8   : > { %s998_s23 = scalar_select %p20_p0, %s936_s18, %s22_s22  }
   0x9   : > { %p31_p3 = por %p30_p2, %p29_p1  ;;  %153 = sbr.rel (%p756_p4) target bundleno = 23 (0x17), region = 28 }
  0x10   : > { %156 = sbr.rel (!%p31_p3) target bundleno = 23 (0x17), region = 32  ;;  %s158_s24 = sand.u32 (%p31_p3), 1, %s936_s18  }
  0x11   : > { %s758_s25 = sshll.u32 (%p31_p3), %s940_s19, 2  ;;  %s757_s26 = sshll.u32 (%p31_p3), %s158_s24, 3 }
  0x12   : > { %s162_s29 = scalar_lea.vmem (%p31_p3), %s1105_s0, %s758_s25  ;;  %s160_s30 = scalar_lea.vmem (%p31_p3), [#allocation3], %s757_s26 }
  0x13   : > { %v178_v0 = vld [vmem:[%s162_s29] sm:$0xf] (%p31_p3)  ;;  %v180_v1 = vld [vmem:[%s162_s29 + $0x8] sm:$0xf] (%p31_p3) }
  0x14   : > { %179 = vst [vmem:[%s160_s30] sm:$0xf] (%p31_p3), %v178_v0  ;;  %181 = vst [vmem:[%s160_s30 + $0x4] sm:$0xf] (%p31_p3), %v180_v1 }
  0x17 PF: > { %p759_p5 = scmp.ge.s32.totalorder %s940_s19, 1  ;;  %p207_p6 = scmp.lt.s32.totalorder %s940_s19, 3 }
  0x19   : > { %p208_p7 = pnand %p759_p5, %p207_p6 }
  0x1a   : > { %s214_s5 = sand.u32 (!%p208_p7), 1, %s932_s17   ;;  %vm411_vm0 = vcmask (!%p208_p7), 1044480   ;;  %vm412_vm1 = vcmask (!%p208_p7), 1045504   ;;  %v942_v2 = vmov (!%p208_p7), 65535   ;;  %v898_v4 = vld [vmem:[%s1106_s1] sm:$0xff] (!%p208_p7)   ;;  %vm362_vm2 = vcmask (!%p208_p7), 89088  }
  0x1b   : > { %211 = sbr.rel (%p208_p7) target bundleno = 563 (0x233), region = 73  ;;  %s760_s6 = sshll.u32 (!%p208_p7), %s214_s5, 3  ;;  %v413_v3 = vsel (!%p208_p7), %vm411_vm0, 4294967295, %v942_v2  ;;  %839 = vmatprep.mubr.msk.bf16.mxu0 (!%p208_p7), %vm362_vm2, %v898_v4  ;;  %v899_v8 = vld [vmem:[%s1106_s1 + $0x8] sm:$0xff] (!%p208_p7)   ;;  %v900_v9 = vld [vmem:[%s1106_s1 + $0x10] sm:$0xff] (!%p208_p7)   ;;  %v901_v10 = vld [vmem:[%s1106_s1 + $0x18] sm:$0xff] (!%p208_p7)   ;;  %v640_v25 = vlaneseq (!%p208_p7) }
  0x1c   : > { %v414_v5 = vsel (!%p208_p7), %vm412_vm1, %v413_v3, 0  ;;  %s216_s9 = scalar_lea.vmem (!%p208_p7), [#allocation3], %s760_s6  ;;  %v902_v11 = vld [vmem:[%s1106_s1 + $0x20] sm:$0xff] (!%p208_p7)   ;;  %v903_v12 = vld [vmem:[%s1106_s1 + $0x28] sm:$0xff] (!%p208_p7)   ;;  %v904_v13 = vld [vmem:[%s1106_s1 + $0x30] sm:$0xff] (!%p208_p7)   ;;  %s276_s24 = sld [smem:[#allocation2]] (!%p208_p7) }
  0x1d   : > { %v897_v6 = vld [vmem:[%s216_s9] sm:$0x3f] (!%p208_p7)   ;;  %v905_v14 = vld [vmem:[%s1106_s1 + $0x38] sm:$0xff] (!%p208_p7)   ;;  %v908_v17 = vld [vmem:[%s1106_s1 + $0x50] sm:$0xff] (!%p208_p7)   ;;  %v943_v23 = vmov (!%p208_p7), 1966171168  }
  0x1e   : > { %v416_v7 = vand.u32 (!%p208_p7), %v897_v6, %v414_v5  ;;  %v906_v15 = vld [vmem:[%s1106_s1 + $0x40] sm:$0xff] (!%p208_p7)   ;;  %v907_v16 = vld [vmem:[%s1106_s1 + $0x48] sm:$0xff] (!%p208_p7)   ;;  %v909_v18 = vld [vmem:[%s1106_s1 + $0x58] sm:$0xff] (!%p208_p7)   ;;  %v638_v24 = vunpack.c.l.s4 (!%p208_p7), %v943_v23  ;;  %v641_v27 = vshrl.u32 (!%p208_p7), %v640_v25, 7  ;;  %p237_p8 = scmp.lt.s32.totalorder (!%p208_p7), %s753_s3, 1 }
  0x1f   : > { %v910_v19 = vld [vmem:[%s1106_s1 + $0x60] sm:$0xff] (!%p208_p7)   ;;  %v911_v20 = vld [vmem:[%s1106_s1 + $0x68] sm:$0xff] (!%p208_p7)   ;;  %v912_v21 = vld [vmem:[%s1106_s1 + $0x70] sm:$0xff] (!%p208_p7)  }
  0x20   : > { %837 = vmatprep.subr.bf16.mxu0 (!%p208_p7), %v416_v7  ;;  %v913_v22 = vld [vmem:[%s1106_s1 + $0x78] sm:$0xff] (!%p208_p7)   ;;  %v639_v26 = vunpack.c.0.s8 (!%p208_p7), %v638_v24  ;;  %v1076_v28 = vld.sshfl [vmem:[%s1107_s2] sm:$0x11 pattern:$0x75316420] (!%p208_p7) }
  0x21   : > { %838 = vmatpush3.bf16.msra.mxu0 (!%p208_p7), %v416_v7  ;;  %v636_v29 = vcombine.high (!%p208_p7), %v1076_v28, %v1076_v28 }
  0x22   : > { %v1080_v30 = vsub.s32 %v639_v26, %v641_v27  ;;  %s1114_s3 = smov (!%p237_p8, %s753_s3), 1 }
  0x23   : > { %s239_s27 = scalar_lea.vmem %s1109_s4, %s1114_s3 }
  0x24   : > { %840 = vmatmul.mubr.msk.bf16.vlgmr.msra.gmra.mrb[0].mxu0 %vm362_vm2, %v899_v8  ;;  %v650_v31 = vrot.slane %v636_v29, %v1080_v30  ;;  %v643_v32 = vrot.slane %v1076_v28, %v1080_v30 }
  0x25   : > { %843 = vmatprep.mubr.msk.bf16.mxu0 %vm362_vm2, %v900_v9 }
  0x26   : > { %685 = vmatprep.mubr.bf16.mxu1 %v650_v31 }
  0x2c   : > { %844 = vmatmul.mubr.msk.bf16.gmra.mrb[4].mxu0 %vm362_vm2, %v901_v10 }
  0x2d   : > { %847 = vmatprep.mubr.msk.bf16.mxu0 %vm362_vm2, %v902_v11 }
  0x34   : > { %848 = vmatmul.mubr.msk.bf16.gmra.mrb[8].mxu0 %vm362_vm2, %v903_v12 }
  0x35   : > { %851 = vmatprep.mubr.msk.bf16.mxu0 %vm362_vm2, %v904_v13 }
  0x3c   : > { %852 = vmatmul.mubr.msk.bf16.gmra.mrb[12].mxu0 %vm362_vm2, %v905_v14 }
  0x3d   : > { %855 = vmatprep.mubr.msk.bf16.mxu0 %vm362_vm2, %v906_v15 }
  0x44   : > { %856 = vmatmul.mubr.msk.bf16.gmra.mrb[16].mxu0 %vm362_vm2, %v907_v16 }
  0x45   : > { %859 = vmatprep.mubr.msk.bf16.mxu0 %vm362_vm2, %v908_v17 }
  0x4c   : > { %860 = vmatmul.mubr.msk.bf16.gmra.mrb[20].mxu0 %vm362_vm2, %v909_v18 }
  0x4d   : > { %863 = vmatprep.mubr.msk.bf16.mxu0 %vm362_vm2, %v910_v19 }
  0x54   : > { %864 = vmatmul.mubr.msk.bf16.gmra.mrb[24].mxu0 %vm362_vm2, %v911_v20 }
  0x55   : > { %867 = vmatprep.mubr.msk.bf16.mxu0 %vm362_vm2, %v912_v21 }
  0x5c   : > { %868 = vmatmul.mubr.msk.bf16.gmra.mrb[28].mxu0 %vm362_vm2, %v913_v22 }
  0xf7   : > { %v841_v33 = vpop.f32.mrb[0].mxu0 }
  0xf8   : > { %v452_v34 = vpop.f32.mrb[1].mxu0  ;;  %v581_v36 = vmax.f32 %v841_v33, 0.0 }
  0xf9   : > { %v842_v35 = vpop.f32.mrb[2].mxu0  ;;  %v579_v39 = vmax.f32 %v452_v34, 0.0 }
  0xfa   : > { %v582_v37 = vmax.f32 %v842_v35, 0.0  ;;  %v455_v38 = vpop.f32.mrb[3].mxu0 }
  0xfb   : > { %v580_v40 = vmax.f32 %v455_v38, 0.0 }
  0xfc   : > { %v612_v41 = vpack.c.bf16 %v582_v37, %v581_v36 }
  0xfd   : > { %v611_v42 = vpack.c.bf16 %v580_v40, %v579_v39 }
  0xff   : > { %v845_v43 = vpop.f32.mrb[4].mxu0 }
 0x100   : > { %v468_v44 = vpop.f32.mrb[5].mxu0  ;;  %v585_v46 = vmax.f32 %v845_v43, 0.0 }
 0x101   : > { %v846_v45 = vpop.f32.mrb[6].mxu0  ;;  %v583_v49 = vmax.f32 %v468_v44, 0.0 }
 0x102   : > { %v586_v47 = vmax.f32 %v846_v45, 0.0  ;;  %v471_v48 = vpop.f32.mrb[7].mxu0 }
 0x103   : > { %v584_v50 = vmax.f32 %v471_v48, 0.0 }
 0x104   : > { %v614_v51 = vpack.c.bf16 %v586_v47, %v585_v46 }
 0x105   : > { %v613_v52 = vpack.c.bf16 %v584_v50, %v583_v49 }
 0x107   : > { %v849_v53 = vpop.f32.mrb[8].mxu0 }
 0x108   : > { %v484_v54 = vpop.f32.mrb[9].mxu0  ;;  %v589_v56 = vmax.f32 %v849_v53, 0.0  ;;  %v627_v53 = vstv %s276_s24 }
 0x109   : > { %v850_v55 = vpop.f32.mrb[10].mxu0  ;;  %v587_v59 = vmax.f32 %v484_v54, 0.0 }
 0x10a   : > { %v590_v57 = vmax.f32 %v850_v55, 0.0  ;;  %v487_v58 = vpop.f32.mrb[11].mxu0 }
 0x10b   : > { %v588_v60 = vmax.f32 %v487_v58, 0.0 }
 0x10c   : > { %v616_v61 = vpack.c.bf16 %v590_v57, %v589_v56 }
 0x10d   : > { %v615_v62 = vpack.c.bf16 %v588_v60, %v587_v59 }
 0x10f   : > { %v853_v63 = vpop.f32.mrb[12].mxu0 }
 0x110   : > { %v500_v0 = vpop.f32.mrb[13].mxu0  ;;  %v593_v2 = vmax.f32 %v853_v63, 0.0 }
 0x111   : > { %v854_v1 = vpop.f32.mrb[14].mxu0  ;;  %v591_v5 = vmax.f32 %v500_v0, 0.0 }
 0x112   : > { %v594_v3 = vmax.f32 %v854_v1, 0.0  ;;  %v503_v4 = vpop.f32.mrb[15].mxu0 }
 0x113   : > { %v592_v6 = vmax.f32 %v503_v4, 0.0 }
 0x114   : > { %v618_v7 = vpack.c.bf16 %v594_v3, %v593_v2 }
 0x115   : > { %v617_v8 = vpack.c.bf16 %v592_v6, %v591_v5 }
 0x117   : > { %v857_v9 = vpop.f32.mrb[16].mxu0 }
 0x118   : > { %v516_v10 = vpop.f32.mrb[17].mxu0  ;;  %v597_v12 = vmax.f32 %v857_v9, 0.0 }
 0x119   : > { %v858_v11 = vpop.f32.mrb[18].mxu0  ;;  %v595_v15 = vmax.f32 %v516_v10, 0.0 }
 0x11a   : > { %v598_v13 = vmax.f32 %v858_v11, 0.0  ;;  %v519_v14 = vpop.f32.mrb[19].mxu0 }
 0x11b   : > { %v596_v16 = vmax.f32 %v519_v14, 0.0 }
 0x11c   : > { %v620_v17 = vpack.c.bf16 %v598_v13, %v597_v12 }
 0x11d   : > { %v619_v18 = vpack.c.bf16 %v596_v16, %v595_v15 }
 0x11f   : > { %v861_v19 = vpop.f32.mrb[20].mxu0  ;;  %815 = vmatprep.subr.bf16.mxu1 %v619_v18 }
 0x120   : > { %v532_v20 = vpop.f32.mrb[21].mxu0  ;;  %816 = vmatpush3.bf16.msra.mxu1 %v611_v42  ;;  %v601_v22 = vmax.f32 %v861_v19, 0.0 }
 0x121   : > { %v862_v21 = vpop.f32.mrb[22].mxu0  ;;  %817 = vmatprep.subr.bf16.mxu1 %v620_v17  ;;  %v599_v25 = vmax.f32 %v532_v20, 0.0 }
 0x122   : > { %v602_v23 = vmax.f32 %v862_v21, 0.0  ;;  %v535_v24 = vpop.f32.mrb[23].mxu0 }
 0x123   : > { %v600_v26 = vmax.f32 %v535_v24, 0.0 }
 0x124   : > { %v622_v27 = vpack.c.bf16 %v602_v23, %v601_v22  ;;  %818 = vmatpush3.bf16.msra.mxu1 %v612_v41 }
 0x125   : > { %v621_v29 = vpack.c.bf16 %v600_v26, %v599_v25 }
 0x127   : > { %v865_v31 = vpop.f32.mrb[24].mxu0  ;;  %819 = vmatprep.subr.bf16.mxu1 %v621_v29 }
 0x128   : > { %v548_v33 = vpop.f32.mrb[25].mxu0  ;;  %820 = vmatpush3.bf16.msra.mxu1 %v613_v52  ;;  %v605_v35 = vmax.f32 %v865_v31, 0.0 }
 0x129   : > { %v866_v34 = vpop.f32.mrb[26].mxu0  ;;  %821 = vmatprep.subr.bf16.mxu1 %v622_v27  ;;  %v603_v38 = vmax.f32 %v548_v33, 0.0 }
 0x12a   : > { %v606_v36 = vmax.f32 %v866_v34, 0.0  ;;  %v551_v37 = vpop.f32.mrb[27].mxu0 }
 0x12b   : > { %v604_v39 = vmax.f32 %v551_v37, 0.0 }
 0x12c   : > { %v624_v40 = vpack.c.bf16 %v606_v36, %v605_v35  ;;  %822 = vmatpush3.bf16.msra.mxu1 %v614_v51 }
 0x12d   : > { %v623_v42 = vpack.c.bf16 %v604_v39, %v603_v38 }
 0x12f   : > { %v869_v43 = vpop.f32.mrb[28].mxu0  ;;  %823 = vmatprep.subr.bf16.mxu1 %v623_v42 }
 0x130   : > { %v564_v44 = vpop.f32.mrb[29].mxu0  ;;  %824 = vmatpush3.bf16.msra.mxu1 %v615_v62  ;;  %v609_v45 = vmax.f32 %v869_v43, 0.0 }
 0x131   : > { %v870_v41 = vpop.f32.mrb[30].mxu0  ;;  %825 = vmatprep.subr.bf16.mxu1 %v624_v40  ;;  %v607_v48 = vmax.f32 %v564_v44, 0.0 }
 0x132   : > { %v610_v46 = vmax.f32 %v870_v41, 0.0  ;;  %v567_v47 = vpop.f32.mrb[31].mxu0 }
 0x133   : > { %v608_v49 = vmax.f32 %v567_v47, 0.0 }
 0x134   : > { %v626_v50 = vpack.c.bf16 %v610_v46, %v609_v45  ;;  %826 = vmatpush3.bf16.msra.mxu1 %v616_v61 }
 0x135   : > { %v625_v52 = vpack.c.bf16 %v608_v49, %v607_v48 }
 0x137   : > { %827 = vmatprep.subr.bf16.mxu1 %v625_v52 }
 0x138   : > { %828 = vmatpush3.bf16.msra.mxu1 %v617_v8 }
 0x139   : > { %829 = vmatprep.subr.bf16.mxu1 %v626_v50 }
 0x13c   : > { %830 = vmatpush3.bf16.msra.mxu1 %v618_v7 }
 0x13f   : > { %686 = vmatmul.mubr.bf16.vlgmr.msra.gmra.mrb[0].mxu1 %v643_v32 }
 0x212   : > { %v831_v51 = vpop.f32.mrb[0].mxu1 }
 0x213   : > { %v832_v54 = vpop.f32.mrb[1].mxu1 }
 0x214   : > { %v833_v55 = vadd.f32 %v832_v54, %v831_v51  ;;  %v834_v56 = vpop.f32.mrb[2].mxu1 }
 0x215   : > { %v835_v57 = vpop.f32.mrb[3].mxu1 }
 0x216   : > { %v688_v58 = vadd.f32 %v833_v55, %v627_v53 }
 0x218   : > { %v795_v59 = vmul.f32 -1.442695, %v688_v58 }
 0x21a   : > { %914 = vpow2.f32 %v795_v59 }
 0x224   : > { %v915_v60 = vpop.eup %914 }
 0x225   : > { %v696_v61 = vadd.f32 1.0, %v915_v60 }
 0x227   : > { %916 = vrcp.f32 %v696_v61 }
 0x231   : > { %v917_v28 = vpop.eup %916 }
 0x232   : > { %699 = vst [vmem:[%s239_s27] sm:$0x1] %v917_v28 }
 0x233 PF: > { %p12_p9 = scmp.ge.s32.totalorder %s989_s20, 4   ;;  %s1110_s17 = smov %s936_s18 }
 0x234   : > { %s1111_s18 = smov %s998_s23  ;;  %s1112_s19 = smov %s989_s20 }
 0x235   :  { %14 = sbr.rel (!%p12_p9) target bundleno = 4 (0x4), region = 112 }

</bundles_post_ra>
